<compile_context>
chip_gen: v6e
topology: v6e:2x2x1
jax: 0.10.0
libtpu: 0.0.40
codegen_flags: <defaults>
</compile_context>

<pallas_src>
import functools

import jax
import jax.numpy as jnp
from jax.experimental import pallas as pl
from jax.experimental.pallas import tpu as pltpu


def _vmem_capacity_bytes():
    """Physical VMEM per TensorCore (128 MiB v5e/v6e, 64 MiB v7x)."""
    try:
        cap = int(pltpu.get_tpu_info().vmem_capacity_bytes)
        if cap > 0:
            return cap
    except Exception:
        pass
    return 64 * 1024 * 1024  # conservative fallback (v7x per-TC VMEM)


def _mask_ragged(xt, k, tk, k_total):
    """Zero columns past the valid K extent (Pallas does not zero-fill OOB)."""
    col = jax.lax.broadcasted_iota(jnp.int32, xt.shape, 1)
    limit = k_total - k * tk  # >= tk for non-last tiles -> mask is all-true
    return jnp.where(col < limit, xt, jnp.zeros_like(xt))


def _accumulate(g_ref, contrib, k, n_k, inv_total):
    """Accumulate into the resident output gram block; scale on last step."""
    if n_k == 1:  # static fast path: single K tile
        g_ref[...] = contrib * inv_total
        return

    @pl.when(k == 0)
    def _():
        g_ref[...] = contrib          # direct write: no zero-init vst/vld pass

    @pl.when(k > 0)
    def _():
        g_ref[...] += contrib

    @pl.when(k == n_k - 1)
    def _():
        g_ref[...] = g_ref[...] * inv_total


def _gram_kernel(x_ref, g_ref, *, inv_total, k_total, tk, ragged, n_k):
    """Single-axis path (small / mem-bound M): X streamed once over K tiles."""
    k = pl.program_id(0)
    xt = x_ref[...]
    if ragged:
        xt = _mask_ragged(xt, k, tk, k_total)
    contrib = jax.lax.dot_general(
        xt, xt,
        dimension_numbers=(((1,), (1,)), ((), ())),   # X @ X.T, no XLU xpose
        preferred_element_type=jnp.float32,
    )
    _accumulate(g_ref, contrib, k, n_k, inv_total)


def _gram_rowblock_kernel(xl_ref, xr_ref, g_ref, *, inv_total, k_total, tk,
                          ragged, n_k):
    """Row-block path (large / compute-bound M): row axis is 'parallel'."""
    k = pl.program_id(1)
    xl = xl_ref[...]
    xr = xr_ref[...]
    if ragged:
        xl = _mask_ragged(xl, k, tk, k_total)
        xr = _mask_ragged(xr, k, tk, k_total)
    contrib = jax.lax.dot_general(
        xl, xr,
        dimension_numbers=(((1,), (1,)), ((), ())),
        preferred_element_type=jnp.float32,
    )
    _accumulate(g_ref, contrib, k, n_k, inv_total)


def gram_matrix(x, *, stream_in_bf16=False):
    """Pallas gram matrix: reshape(d0*d1, d2*d3) -> X @ X.T / (d0*d1*d2*d3)."""
    d0, d1, d2, d3 = x.shape
    M = d0 * d1
    K = d2 * d3
    inv_total = 1.0 / float(d0 * d1 * d2 * d3)

    # Stream the flattened features as-is (no padding copies in HBM).
    feats = x.reshape(M, K)
    if stream_in_bf16 and feats.dtype == jnp.float32:
        feats = feats.astype(jnp.bfloat16)   # halves HBM bytes; f32 accum kept
    dtype_bytes = jnp.dtype(feats.dtype).itemsize

    # Generation-aware VMEM budgets (v5e/v6e 128 MiB, v7x 64 MiB).
    vmem_cap = _vmem_capacity_bytes()
    stream_budget = int(vmem_cap * 0.60)
    vmem_limit = int(min(vmem_cap * 0.70, vmem_cap - 4 * 1024 * 1024))

    # Large-M path: split gram rows over a 'parallel' axis so v7x's two
    # TensorCores both run.  Small M keeps the single streaming pass (the row
    # split re-reads the RHS -> extra HBM traffic in the mem-bound regime).
    use_rowblock = (M >= 256) and (M % 128 == 0)
    tm = 128 if use_rowblock else M
    stream_rows = (tm + M) if use_rowblock else M   # rows DMA'd per grid step

    # Largest K tile (128-multiple, or full K) that fits next to the resident
    # f32 gram block with double-buffered inputs.  Sized by VMEM, not a fixed
    # cap, so the ~0.35us per-grid-step overhead stays amortized at small M.
    gram_bytes = tm * M * 4
    avail = max(stream_budget - 2 * gram_bytes,
                2 * stream_rows * dtype_bytes * 128)
    tk_cap = avail // (2 * stream_rows * dtype_bytes)
    if K <= tk_cap:
        tk, n_k, ragged = K, 1, False            # whole K in one tile
    else:
        tk = max(128, (tk_cap // 128) * 128)
        n_k = -(-K // tk)
        ragged = (K % tk) != 0                   # mask last tile in-kernel

    params = dict(inv_total=inv_total, k_total=K, tk=tk, ragged=ragged, n_k=n_k)

    if use_rowblock:
        # TODO(synk): exploit gram symmetry (skip lower-triangular row blocks
        # and mirror in the wrapper) for the compute-bound large-M case.
        return pl.pallas_call(
            functools.partial(_gram_rowblock_kernel, **params),
            out_shape=jax.ShapeDtypeStruct((M, M), jnp.float32),
            grid_spec=pltpu.PrefetchScalarGridSpec(
                num_scalar_prefetch=0,
                grid=(M // tm, n_k),
                in_specs=[
                    pl.BlockSpec((tm, tk), lambda i, k: (i, k)),   # row block
                    pl.BlockSpec((M, tk), lambda i, k: (0, k)),    # all rows
                ],
                out_specs=pl.BlockSpec((tm, M), lambda i, k: (i, 0)),
            ),
            compiler_params=pltpu.CompilerParams(
                dimension_semantics=("parallel", "arbitrary"),
                vmem_limit_bytes=vmem_limit,
            ),
        )(feats, feats)

    return pl.pallas_call(
        functools.partial(_gram_kernel, **params),
        out_shape=jax.ShapeDtypeStruct((M, M), jnp.float32),
        grid_spec=pltpu.PrefetchScalarGridSpec(
            num_scalar_prefetch=0,
            grid=(n_k,),
            in_specs=[pl.BlockSpec((M, tk), lambda k: (0, k))],    # streamed K
            out_specs=pl.BlockSpec((M, M), lambda k: (0, 0)),      # resident acc
        ),
        compiler_params=pltpu.CompilerParams(
            dimension_semantics=("arbitrary",),    # K is a reduction axis
            vmem_limit_bytes=vmem_limit,
        ),
    )(feats)


class StyleLoss:
    """Pallas equivalent of the PyTorch StyleLoss module (no learnable params).

    Note: like the PyTorch module, __call__ mutates self.loss; this mirrors the
    reference semantics but is not functional/jit-safe if traced inside jax.jit.
    """

    def __init__(self, target_feature):
        self.target = jax.lax.stop_gradient(gram_matrix(target_feature))  # .detach()
        # F.mse_loss(self.target, self.target) is exactly zero; skip the
        # redundant second pass over the target feature map.
        self.loss = jnp.zeros((), jnp.float32)

    def __call__(self, x):
        G = gram_matrix(x)
        # Trivial MxM reduction; plain JAX keeps kernel VMEM for big K tiles.
        self.loss = jnp.mean((G - self.target) ** 2)
        return x


def _ref_gram(inp):
    d0, d1, d2, d3 = inp.shape
    f = inp.reshape(d0 * d1, d2 * d3)
    return (f @ f.T) / (d0 * d1 * d2 * d3)


if __name__ == "__main__":
    key = jax.random.PRNGKey(0)
    k1, k2 = jax.random.split(key)
    # Feature maps as produced by the upstream convs.
    target_feature = jax.random.normal(k1, (2, 4, 16, 16), jnp.float32)
    x = jax.random.normal(k2, (2, 4, 16, 16), jnp.float32)

    module = StyleLoss(target_feature)
    out = module(x)
    loss = module.loss
    jax.block_until_ready(out)
    jax.block_until_ready(loss)

    # Pure-JAX reference check.
    G_ref = _ref_gram(x)
    T_ref = _ref_gram(target_feature)
    loss_ref = jnp.mean((G_ref - T_ref) ** 2)
    assert jnp.allclose(out, x), "forward must return its input unchanged"
    assert jnp.allclose(loss, loss_ref, rtol=1e-5, atol=1e-6), (loss, loss_ref)

    print("KERNEL_OK")
</pallas_src>

<mosaic_0001>
module attributes {stable_mosaic.version = 11 : i64} {
  func.func @_gram_kernel(%arg0: i32, %arg1: memref<8x256xf32, #tpu.memory_space<vmem>>, %arg2: memref<8x8xf32, #tpu.memory_space<vmem>>) attributes {dimension_semantics = [#tpu.dimension_semantics<arbitrary>], iteration_bounds = array<i64: 1>, scalar_prefetch = 0 : i64, scratch_operands = 0 : i64, tpu.core_type = #tpu.core_type<tc>, window_params = [{transform_indices = @transform_0, window_bounds = array<i64: 8, 256>}, {pipeline_mode = #tpu.pipeline_mode<synchronous>, transform_indices = @transform_1, window_bounds = array<i64: 8, 8>}]} {
    %c0 = arith.constant 0 : index
    %c0_0 = arith.constant 0 : index
    %0 = vector.load %arg1[%c0, %c0_0] : memref<8x256xf32, #tpu.memory_space<vmem>>, vector<8x256xf32>
    %cst = arith.constant dense<0.000000e+00> : vector<8x8xf32>
    %1 = tpu.matmul %0, %0, %cst {dimension_numbers = #tpu.dot_dimension_numbers<[1], [1], [0], [0], [0, 0, 1, 0], [], []>} : vector<8x256xf32>, vector<8x256xf32>, vector<8x8xf32> -> vector<8x8xf32>
    %cst_1 = arith.constant 4.8828125E-4 : f32
    %2 = vector.broadcast %cst_1 : f32 to vector<8x8xf32>
    %3 = arith.mulf %1, %2 : vector<8x8xf32>
    %c0_2 = arith.constant 0 : index
    %c0_3 = arith.constant 0 : index
    %4 = vector.load %arg2[%c0_2, %c0_3] : memref<8x8xf32, #tpu.memory_space<vmem>>, vector<8x8xf32>
    tpu.vector_store %arg2[%c0_2, %c0_3], %3 {strides = array<i32>} : memref<8x8xf32, #tpu.memory_space<vmem>>, vector<8x8xf32>,
    return
  }
  func.func @transform_0(%arg0: i32) -> (i32, i32) {
    %c0_i32 = arith.constant 0 : i32
    %c0_i32_0 = arith.constant 0 : i32
    return %c0_i32, %arg0 : i32, i32
  }
  func.func @transform_1(%arg0: i32) -> (i32, i32) {
    %c0_i32 = arith.constant 0 : i32
    %c0_i32_0 = arith.constant 0 : i32
    %c0_i32_1 = arith.constant 0 : i32
    return %c0_i32, %c0_i32_0 : i32, i32
  }
}

</mosaic_0001>

<bundles_post_ra>
// kernel: tpu_custom_call.1
= control target key start
LH: loop header
LB: loop body
LE: loop exit
PB: predicated region body
PF: predicated region fallthrough
CT: control target
= control target key end

     0   :  { %6 = vsyncpa [#allocation3], 0  ;;  %s175_s0 = inlined_call_operand.hbm [shape: f32[8,256], index: 0, kind: input, shape index: {}]   ;;  %s176_s1 = inlined_call_operand.hbm [shape: f32[8,8], index: 1, kind: output, shape index: {}]  }
   0x1   :  { %7 = vsyncpa [#allocation4], 0  ;;  %s157_s6 = smov [#allocation2]  }
   0x2   :  { %s14_s7 = sshll.u32 %s157_s6, 4  ;;  %s15_s7 = int_to_ptr.vmem [resolvable:$true] %s14_s7 }
   0x3   :  { %s121_s8 = scalar_lea.vmem %s15_s7, 256  ;;  %p126_p1 = scmp.lt.s32.totalorder %s15_s7, %s15_s7 }
   0x4   :  { %p122_p0 = scmp.ne.s32.totalorder %s15_s7, %s121_s8  ;;  %p127_p2 = scmp.lt.s32.totalorder %s121_s8, %s121_s8 }
   0x6   :  { %p128_p3 = por %p127_p2, %p126_p1 }
   0x8   :  { %p129_p4 = pnand %p128_p3, %p122_p0 }
   0xa   :  { %132 = shalt.err (!%p129_p4)
}
   0xb   :  { %17 = dma.hbm_to_vmem [thread:$0]  %s175_s0, 256, %s15_s7, [#allocation3]  }
   0xc   :  { %153 = dma.done.wait [#allocation3], 256  }
   0xd   :  { %154 = vsyncadd [#allocation3], 4294967040  ;;  %v22_v0 = vld [vmem:[#allocation2 + $0x8] sm:$0xff]  ;;  %v21_v1 = vld [vmem:[#allocation2] sm:$0xff]  ;;  %s158_s11 = smov [#allocation5]   ;;  %vm94_vm0 = vcmask 64512  }
   0xe   :  { %53 = vmatprep.subr.mxu0 %v22_v0  ;;  %87 = vmatprep.mubr.f32.mxu0 %v22_v0  ;;  %s102_s12 = sshll.u32 %s158_s11, 4  ;;  %s103_s12 = int_to_ptr.vmem [resolvable:$true] %s102_s12 }
   0xf   :  { %54 = vmatpush1.xpose.msra.mxu0 %v21_v1  ;;  %s133_s13 = scalar_lea.vmem %s103_s12, 128  ;;  %p138_p6 = scmp.lt.s32.totalorder %s103_s12, %s103_s12 }
  0x10   :  { %p134_p5 = scmp.ne.s32.totalorder %s103_s12, %s133_s13  ;;  %p139_p7 = scmp.lt.s32.totalorder %s133_s13, %s133_s13 }
  0x12   :  { %88 = vmatmul.mubr.f32.vlgmr.msra.gmra.mxu0 %v21_v1  ;;  %p140_p8 = por %p139_p7, %p138_p6 }
  0x14   :  { %p141_p9 = pnand %p140_p8, %p134_p5 }
  0xd2   :  { %v89_v2 = vpop.f32.mrf.mxu0 }
  0xd3   :  { %v93_v3 = vmul.f32 0.00048828125, %v89_v2 }
  0xd4   :  { %v91_v4 = vpop.f32.mrf.mxu0 }
  0xd5   :  { %95 = vst.msk [vmem:[#allocation5] sm:$0xff] %vm94_vm0, %v93_v3 }
  0xd6   :  { %144 = shalt.err (!%p141_p9)
}
  0xd7   :  { %105 = dma.vmem_to_hbm [thread:$0]  %s103_s12, 128, %s176_s1, [#allocation4]  }
  0xd8   :  { %155 = dma.done.wait [#allocation4], 128  }
  0xd9   :  { %156 = vsyncadd [#allocation4], 4294967168 }
  0xda   :  { %109 = vsyncpa [#allocation3], 1 }
  0xdb   :  { %110 = vsyncpa [#allocation4], 1 }

</bundles_post_ra>
